<compile_context>
chip_gen: v6e
topology: v6e:2x2x1
jax: 0.10.0
libtpu: 0.0.40
codegen_flags: <defaults>
</compile_context>

<pallas_src>
import jax
import jax.numpy as jnp
from jax.experimental import pallas as pl
from jax.experimental.pallas import tpu as pltpu


def _round_up(x, m):
    return (x + m - 1) // m * m


def _make_kernel(n_layers):
    """Fused MLP head over one batch tile: (Linear+ReLU)*(n-1) -> Linear."""

    def kernel(*refs):
        x_ref = refs[0]
        o_ref = refs[-1]
        wb = refs[1:-1]  # interleaved (w_ref, b_ref) pairs

        # Cast activations to bf16 only at the MXU boundary; accumulate in f32,
        # bias-add / ReLU in f32 (v5e has no bf16 VPU).
        h = x_ref[...]
        for l in range(n_layers):
            w_ref = wb[2 * l]
            b_ref = wb[2 * l + 1]
            h = jnp.dot(h.astype(jnp.bfloat16), w_ref[...],
                        preferred_element_type=jnp.float32)
            h = h + b_ref[...]
            if l < n_layers - 1:
                h = jnp.maximum(h, 0.0)  # ReLU; Dropout == identity at inference
        o_ref[...] = h.astype(o_ref.dtype)

    return kernel


def _vmem_budget_bytes():
    """~3/4 of per-core VMEM: ~48 MiB on v7x, ~96 MiB on v5e/v6e."""
    try:
        cap = pltpu.get_tpu_info().vmem_capacity_bytes
    except Exception:
        cap = 64 * 1024 * 1024  # conservative v7x per-TC fallback
    return int(cap) * 3 // 4


def init_params(key, out_channels, num_classes):
    """Deterministic f32 parameter init matching the module's layer shapes."""
    dims = list(out_channels) + [num_classes]
    params = {}
    for i in range(len(dims) - 1):
        key, kw, kb = jax.random.split(key, 3)
        fan_in, fan_out = dims[i], dims[i + 1]
        bound = 1.0 / jnp.sqrt(fan_in)
        params[f"w{i}"] = jax.random.uniform(
            kw, (fan_in, fan_out), jnp.float32, -bound, bound)
        params[f"b{i}"] = jax.random.uniform(
            kb, (1, fan_out), jnp.float32, -bound, bound)
    return params


def prepare_params(params):
    """One-time packing: bf16 weights, f32 biases, output dims zero-padded to 128.

    Padded columns are exactly zero (bias included), ReLU keeps them zero and they
    contribute 0 to the next matmul -> numerics of valid columns are unchanged.
    The layer-0 input dim is left unpadded so x never needs an HBM pad pass.
    """
    num_layers = len(params) // 2
    layers = []
    prev_pad = 0
    num_classes = None
    for l in range(num_layers):
        w = jnp.asarray(params[f"w{l}"], jnp.float32)
        b = jnp.asarray(params[f"b{l}"], jnp.float32).reshape(1, -1)
        _, out_dim = w.shape
        out_pad = _round_up(out_dim, 128) - out_dim
        w = jnp.pad(w, ((0, prev_pad), (0, out_pad)))
        b = jnp.pad(b, ((0, 0), (0, out_pad)))
        layers.append((w.astype(jnp.bfloat16), b))
        prev_pad = out_pad
        num_classes = out_dim
    return {
        "layers": layers,
        "in_features": int(params["w0"].shape[0]),
        "num_classes": int(num_classes),
    }


def classification_head_forward(x, packed, *, tm=256, out_dtype=jnp.float32):
    """Run the fused classification-head kernel.

    x:      (..., in_features) float32 (cast to bf16 in-kernel for the MXU)
    packed: output of prepare_params()
    tm:     requested batch tile (rounded to a multiple of 16; 512 is a good
            choice on v6e for very large batches)
    out_dtype: logits dtype (use jnp.bfloat16 on v5e to halve store traffic
            if downstream tolerates bf16 logits).
    """
    layers = packed["layers"]
    in_features = packed["in_features"]
    num_classes = packed["num_classes"]

    if x.shape[-1] != in_features:
        raise ValueError(
            f"ClassificationHead expected {in_features} channels as input but "
            f"received {x.shape[-1]}. Check the out_channels parameter.")

    lead = x.shape[:-1]
    x2 = x.reshape(-1, in_features)
    B = x2.shape[0]
    c0 = in_features
    n_pad = layers[-1][0].shape[1]  # lane-padded classifier width

    # --- Batch tile: multiple of 16, aim for >=2 grid steps (v7x megacore),
    #     shrink until the rough VMEM footprint fits the per-core budget. ---
    budget = _vmem_budget_bytes()
    tm = _round_up(max(int(tm), 16), 16)
    two_way = _round_up(pl.cdiv(B, 2), 16)
    tm = min(tm, max(two_way, 16))

    w_bytes = sum(w.size * w.dtype.itemsize + b.size * b.dtype.itemsize
                  for w, b in layers)
    widest = max(w.shape[1] for w, _ in layers)
    out_itemsize = jnp.dtype(out_dtype).itemsize

    def footprint(t):
        return (2 * t * c0 * x2.dtype.itemsize     # double-buffered x tiles
                + 2 * t * n_pad * out_itemsize     # double-buffered out tiles
                + 2 * w_bytes                      # resident weights/biases (x2 worst case)
                + t * widest * 4)                  # live f32 intermediate

    while tm > 16 and footprint(tm) > budget:
        tm = max(16, _round_up(tm // 2, 16))
    # TODO(synk): if weights alone exceed the budget (huge flattened c0), layer 0
    # should be streamed over its K dim instead of kept fully VMEM-resident.

    grid = (pl.cdiv(B, tm),)  # ragged tail handled by Pallas; no x pad in HBM

    in_specs = [pl.BlockSpec((tm, c0), lambda i: (i, 0))]  # streamed x tile
    args = [x2]
    for w, b in layers:
        # Constant-index blocks stay VMEM-resident across grid steps (no re-DMA).
        in_specs.append(pl.BlockSpec(w.shape, lambda i: (0, 0)))
        in_specs.append(pl.BlockSpec(b.shape, lambda i: (0, 0)))
        args += [w, b]

    out = pl.pallas_call(
        _make_kernel(len(layers)),
        out_shape=jax.ShapeDtypeStruct((B, n_pad), out_dtype),
        grid_spec=pltpu.PrefetchScalarGridSpec(
            num_scalar_prefetch=0,
            grid=grid,
            in_specs=in_specs,
            out_specs=pl.BlockSpec((tm, n_pad), lambda i: (i, 0)),
        ),
        compiler_params=pltpu.CompilerParams(
            dimension_semantics=("parallel",),   # shard batch tiles across TCs (v7x)
            vmem_limit_bytes=int(budget),
        ),
    )(*args)

    # Slice away lane padding; leading dims restored.
    return out[:, :num_classes].reshape(*lead, num_classes)


def reference_forward(x, params, num_layers):
    """Pure-JAX reference with the same bf16-matmul / f32-accumulate recipe."""
    h = x
    for l in range(num_layers):
        w = params[f"w{l}"].astype(jnp.bfloat16)
        h = jnp.dot(h.astype(jnp.bfloat16), w,
                    preferred_element_type=jnp.float32) + params[f"b{l}"]
        if l < num_layers - 1:
            h = jnp.maximum(h, 0.0)
    return h


if __name__ == "__main__":
    # Small synthetic configuration: out_channels=[32, 64, 32], num_classes=8
    out_channels = [32, 64, 32]
    num_classes = 8
    batch = 4

    key = jax.random.PRNGKey(0)
    key, kx = jax.random.split(key)
    x = jax.random.normal(kx, (batch, out_channels[0]), jnp.float32)
    params = init_params(key, out_channels, num_classes)

    packed = prepare_params(params)          # one-time weight packing
    out = classification_head_forward(x, packed)
    out = jax.block_until_ready(out)

    ref = reference_forward(x, params, num_layers=len(out_channels))
    assert out.shape == (batch, num_classes)
    assert jnp.allclose(out, ref, atol=2e-2, rtol=2e-2), "mismatch vs reference"

    print("KERNEL_OK")
</pallas_src>

<mosaic_0001>
module attributes {stable_mosaic.version = 11 : i64} {
  func.func @kernel(%arg0: i32, %arg1: memref<16x32xf32, #tpu.memory_space<vmem>>, %arg2: memref<32x128xbf16, #tpu.memory_space<vmem>>, %arg3: memref<1x128xf32, #tpu.memory_space<vmem>>, %arg4: memref<128x128xbf16, #tpu.memory_space<vmem>>, %arg5: memref<1x128xf32, #tpu.memory_space<vmem>>, %arg6: memref<128x128xbf16, #tpu.memory_space<vmem>>, %arg7: memref<1x128xf32, #tpu.memory_space<vmem>>, %arg8: memref<16x128xf32, #tpu.memory_space<vmem>>) attributes {dimension_semantics = [#tpu.dimension_semantics<parallel>], iteration_bounds = array<i64: 1>, scalar_prefetch = 0 : i64, scratch_operands = 0 : i64, tpu.core_type = #tpu.core_type<tc>, window_params = [{transform_indices = @transform_0, window_bounds = array<i64: 16, 32>}, {pipeline_mode = #tpu.pipeline_mode<synchronous>, transform_indices = @transform_1, window_bounds = array<i64: 32, 128>}, {pipeline_mode = #tpu.pipeline_mode<synchronous>, transform_indices = @transform_2, window_bounds = array<i64: 1, 128>}, {pipeline_mode = #tpu.pipeline_mode<synchronous>, transform_indices = @transform_3, window_bounds = array<i64: 128, 128>}, {pipeline_mode = #tpu.pipeline_mode<synchronous>, transform_indices = @transform_4, window_bounds = array<i64: 1, 128>}, {pipeline_mode = #tpu.pipeline_mode<synchronous>, transform_indices = @transform_5, window_bounds = array<i64: 128, 128>}, {pipeline_mode = #tpu.pipeline_mode<synchronous>, transform_indices = @transform_6, window_bounds = array<i64: 1, 128>}, {transform_indices = @transform_7, window_bounds = array<i64: 16, 128>}]} {
    %c0 = arith.constant 0 : index
    %c0_0 = arith.constant 0 : index
    %0 = vector.load %arg1[%c0, %c0_0] : memref<16x32xf32, #tpu.memory_space<vmem>>, vector<16x32xf32>
    %1 = arith.truncf %0 : vector<16x32xf32> to vector<16x32xbf16>
    %c0_1 = arith.constant 0 : index
    %c0_2 = arith.constant 0 : index
    %2 = vector.load %arg2[%c0_1, %c0_2] : memref<32x128xbf16, #tpu.memory_space<vmem>>, vector<32x128xbf16>
    %cst = arith.constant dense<0.000000e+00> : vector<16x128xf32>
    %3 = tpu.matmul %1, %2, %cst {dimension_numbers = #tpu.dot_dimension_numbers<[1], [0], [0], [1], [0, 0, 1, 1], [], []>} : vector<16x32xbf16>, vector<32x128xbf16>, vector<16x128xf32> -> vector<16x128xf32>
    %c0_3 = arith.constant 0 : index
    %c0_4 = arith.constant 0 : index
    %4 = vector.load %arg3[%c0_3, %c0_4] : memref<1x128xf32, #tpu.memory_space<vmem>>, vector<1x128xf32>
    %5 = vector.broadcast %4 : vector<1x128xf32> to vector<16x128xf32>
    %6 = arith.addf %3, %5 : vector<16x128xf32>
    %cst_5 = arith.constant 0.000000e+00 : f32
    %7 = vector.broadcast %cst_5 : f32 to vector<16x128xf32>
    %8 = arith.maximumf %6, %7 : vector<16x128xf32>
    %9 = arith.truncf %8 : vector<16x128xf32> to vector<16x128xbf16>
    %c0_6 = arith.constant 0 : index
    %c0_7 = arith.constant 0 : index
    %10 = vector.load %arg4[%c0_6, %c0_7] : memref<128x128xbf16, #tpu.memory_space<vmem>>, vector<128x128xbf16>
    %cst_8 = arith.constant dense<0.000000e+00> : vector<16x128xf32>
    %11 = tpu.matmul %9, %10, %cst_8 {dimension_numbers = #tpu.dot_dimension_numbers<[1], [0], [0], [1], [0, 0, 1, 1], [], []>} : vector<16x128xbf16>, vector<128x128xbf16>, vector<16x128xf32> -> vector<16x128xf32>
    %c0_9 = arith.constant 0 : index
    %c0_10 = arith.constant 0 : index
    %12 = vector.load %arg5[%c0_9, %c0_10] : memref<1x128xf32, #tpu.memory_space<vmem>>, vector<1x128xf32>
    %13 = vector.broadcast %12 : vector<1x128xf32> to vector<16x128xf32>
    %14 = arith.addf %11, %13 : vector<16x128xf32>
    %cst_11 = arith.constant 0.000000e+00 : f32
    %15 = vector.broadcast %cst_11 : f32 to vector<16x128xf32>
    %16 = arith.maximumf %14, %15 : vector<16x128xf32>
    %17 = arith.truncf %16 : vector<16x128xf32> to vector<16x128xbf16>
    %c0_12 = arith.constant 0 : index
    %c0_13 = arith.constant 0 : index
    %18 = vector.load %arg6[%c0_12, %c0_13] : memref<128x128xbf16, #tpu.memory_space<vmem>>, vector<128x128xbf16>
    %cst_14 = arith.constant dense<0.000000e+00> : vector<16x128xf32>
    %19 = tpu.matmul %17, %18, %cst_14 {dimension_numbers = #tpu.dot_dimension_numbers<[1], [0], [0], [1], [0, 0, 1, 1], [], []>} : vector<16x128xbf16>, vector<128x128xbf16>, vector<16x128xf32> -> vector<16x128xf32>
    %c0_15 = arith.constant 0 : index
    %c0_16 = arith.constant 0 : index
    %20 = vector.load %arg7[%c0_15, %c0_16] : memref<1x128xf32, #tpu.memory_space<vmem>>, vector<1x128xf32>
    %21 = vector.broadcast %20 : vector<1x128xf32> to vector<16x128xf32>
    %22 = arith.addf %19, %21 : vector<16x128xf32>
    %c0_17 = arith.constant 0 : index
    %c0_18 = arith.constant 0 : index
    %23 = vector.load %arg8[%c0_17, %c0_18] : memref<16x128xf32, #tpu.memory_space<vmem>>, vector<16x128xf32>
    tpu.vector_store %arg8[%c0_17, %c0_18], %22 {strides = array<i32>} : memref<16x128xf32, #tpu.memory_space<vmem>>, vector<16x128xf32>,
    return
  }
  func.func @transform_0(%arg0: i32) -> (i32, i32) {
    %c0_i32 = arith.constant 0 : i32
    %c0_i32_0 = arith.constant 0 : i32
    return %arg0, %c0_i32 : i32, i32
  }
  func.func @transform_1(%arg0: i32) -> (i32, i32) {
    %c0_i32 = arith.constant 0 : i32
    %c0_i32_0 = arith.constant 0 : i32
    %c0_i32_1 = arith.constant 0 : i32
    return %c0_i32, %c0_i32_0 : i32, i32
  }
  func.func @transform_2(%arg0: i32) -> (i32, i32) {
    %c0_i32 = arith.constant 0 : i32
    %c0_i32_0 = arith.constant 0 : i32
    %c0_i32_1 = arith.constant 0 : i32
    return %c0_i32, %c0_i32_0 : i32, i32
  }
  func.func @transform_3(%arg0: i32) -> (i32, i32) {
    %c0_i32 = arith.constant 0 : i32
    %c0_i32_0 = arith.constant 0 : i32
    %c0_i32_1 = arith.constant 0 : i32
    return %c0_i32, %c0_i32_0 : i32, i32
  }
  func.func @transform_4(%arg0: i32) -> (i32, i32) {
    %c0_i32 = arith.constant 0 : i32
    %c0_i32_0 = arith.constant 0 : i32
    %c0_i32_1 = arith.constant 0 : i32
    return %c0_i32, %c0_i32_0 : i32, i32
  }
  func.func @transform_5(%arg0: i32) -> (i32, i32) {
    %c0_i32 = arith.constant 0 : i32
    %c0_i32_0 = arith.constant 0 : i32
    %c0_i32_1 = arith.constant 0 : i32
    return %c0_i32, %c0_i32_0 : i32, i32
  }
  func.func @transform_6(%arg0: i32) -> (i32, i32) {
    %c0_i32 = arith.constant 0 : i32
    %c0_i32_0 = arith.constant 0 : i32
    %c0_i32_1 = arith.constant 0 : i32
    return %c0_i32, %c0_i32_0 : i32, i32
  }
  func.func @transform_7(%arg0: i32) -> (i32, i32) {
    %c0_i32 = arith.constant 0 : i32
    %c0_i32_0 = arith.constant 0 : i32
    return %arg0, %c0_i32 : i32, i32
  }
}

</mosaic_0001>

<bundles_post_ra>
// kernel: tpu_custom_call.1
= control target key start
LH: loop header
LB: loop body
LE: loop exit
PB: predicated region body
PF: predicated region fallthrough
CT: control target
= control target key end

     0   :  { %12 = vsyncpa [#allocation3], 0  ;;  %s743_s0 = inlined_call_operand.hbm [shape: f32[4,32], index: 0, kind: input, shape index: {}]   ;;  %s744_s1 = inlined_call_operand.hbm [shape: bf16[32,128], index: 1, kind: input, shape index: {}]   ;;  %s745_s2 = inlined_call_operand.vmem [shape: f32[1,128], index: 2, kind: input, shape index: {}]   ;;  %s746_s3 = inlined_call_operand.hbm [shape: bf16[128,128], index: 3, kind: input, shape index: {}]   ;;  %s747_s4 = inlined_call_operand.vmem [shape: f32[1,128], index: 4, kind: input, shape index: {}]   ;;  %s748_s5 = inlined_call_operand.hbm [shape: bf16[128,128], index: 5, kind: input, shape index: {}]   ;;  %s749_s6 = inlined_call_operand.vmem [shape: f32[1,128], index: 6, kind: input, shape index: {}]   ;;  %s750_s7 = inlined_call_operand.hbm [shape: f32[4,128], index: 7, kind: output, shape index: {}]  }
   0x1   :  { %13 = vsyncpa [#allocation6], 0 }
   0x2   :  { %14 = vsyncpa [#allocation9], 0 }
   0x3   :  { %15 = vsyncpa [#allocation4], 0 }
   0x4   :  { %20 = vsyncadd [#allocation3], 192  ;;  %s631_s24 = smov [#allocation5]   ;;  %s632_s26 = smov [#allocation2]  }
   0x5   :  { %s33_s25 = sshll.u32 %s631_s24, 4  ;;  %s21_s27 = sshll.u32 %s632_s26, 4  ;;  %s34_s25 = int_to_ptr.vmem [resolvable:$true] %s33_s25  ;;  %s22_s27 = int_to_ptr.vmem [resolvable:$true] %s21_s27 }
   0x6   :  { %s531_s28 = scalar_lea.vmem %s34_s25, 256  ;;  %p536_p1 = scmp.lt.s32.totalorder %s34_s25, %s34_s25 }
   0x7   :  { %p532_p0 = scmp.ne.s32.totalorder %s34_s25, %s531_s28  ;;  %p537_p2 = scmp.lt.s32.totalorder %s531_s28, %s531_s28 }
   0x9   :  { %p538_p3 = por %p537_p2, %p536_p1 }
   0xb   :  { %p539_p4 = pnand %p538_p3, %p532_p0 }
   0xd   :  { %542 = shalt.err (!%p539_p4)
}
   0xe   :  { %s633_s29 = smov 64   ;;  %s634_s30 = smov 4  }
   0xf   :  { %39 = dma.hbm_to_vmem [thread:$0]  %s744_s1, 256, %s34_s25, [#allocation6], %s633_s29, %s633_s29, %s634_s30  }
  0x10   :  { %s551_s10 = scalar_lea.vmem %s22_s27, 64  ;;  %s555_s11 = scalar_lea.vmem %s22_s27, 256 }
  0x11   :  { %p552_p5 = scmp.ne.s32.totalorder %s22_s27, %s551_s10  ;;  %p556_p6 = scmp.lt.s32.totalorder %s22_s27, %s22_s27 }
  0x12   :  { %p557_p7 = scmp.lt.s32.totalorder %s555_s11, %s551_s10 }
  0x14   :  { %p558_p8 = por %p557_p7, %p556_p6 }
  0x16   :  { %p559_p9 = pnand %p558_p8, %p552_p5 }
  0x18   :  { %562 = shalt.err (!%p559_p9)
}
  0x19   :  { %27 = dma.hbm_to_vmem [thread:$0]  %s743_s0, 64, %s22_s27, [#allocation3], %s633_s29, %s633_s29, %s634_s30  }
  0x1a   :  { %s635_s14 = smov [#allocation7]   ;;  %s636_s16 = smov [#allocation8]  }
  0x1b   :  { %s47_s15 = sshll.u32 %s635_s14, 4  ;;  %s61_s17 = sshll.u32 %s636_s16, 4  ;;  %s48_s15 = int_to_ptr.vmem [resolvable:$true] %s47_s15  ;;  %s62_s17 = int_to_ptr.vmem [resolvable:$true] %s61_s17 }
  0x1c   :  { %s571_s1 = scalar_lea.vmem %s48_s15, 1024  ;;  %p576_p11 = scmp.lt.s32.totalorder %s48_s15, %s48_s15 }
  0x1d   :  { %p572_p10 = scmp.ne.s32.totalorder %s48_s15, %s571_s1  ;;  %p577_p12 = scmp.lt.s32.totalorder %s571_s1, %s571_s1 }
  0x1f   :  { %p578_p13 = por %p577_p12, %p576_p11 }
  0x21   :  { %p579_p0 = pnand %p578_p13, %p572_p10 }
  0x23   :  { %582 = shalt.err (!%p579_p0)
}
  0x24   :  { %53 = dma.hbm_to_vmem [thread:$0]  %s746_s3, 1024, %s48_s15, [#allocation6], %s633_s29, %s633_s29, %s634_s30  }
  0x25   :  { %s591_s0 = scalar_lea.vmem %s62_s17, 1024  ;;  %p596_p2 = scmp.lt.s32.totalorder %s62_s17, %s62_s17 }
  0x26   :  { %p592_p1 = scmp.ne.s32.totalorder %s62_s17, %s591_s0  ;;  %p597_p3 = scmp.lt.s32.totalorder %s591_s0, %s591_s0 }
  0x28   :  { %p598_p4 = por %p597_p3, %p596_p2 }
  0x2a   :  { %p599_p5 = pnand %p598_p4, %p592_p1 }
  0x2c   :  { %602 = shalt.err (!%p599_p5)
}
  0x2d   :  { %67 = dma.hbm_to_vmem [thread:$0]  %s748_s5, 1024, %s62_s17, [#allocation9], %s633_s29, %s633_s29, %s634_s30  }
  0x2e   :  { %623 = dma.done.wait [#allocation3], 256  }
  0x2f   :  { %624 = vsyncadd [#allocation3], 4294967040 }
  0x30   :  { %625 = dma.done.wait [#allocation6], 1280  }
  0x31   :  { %626 = vsyncadd [#allocation6], 4294966016 }
  0x32   :  { %627 = dma.done.wait [#allocation9], 1024  }
  0x33   :  { %628 = vsyncadd [#allocation9], 4294966272  ;;  %v637_v0 = vmov 0.0   ;;  %vm638_vm0 = vmmov 0   ;;  %v505_v1 = vld [vmem:[#allocation5 + $0x8] sm:$0xff]   ;;  %v506_v2 = vld [vmem:[#allocation5] sm:$0xff]  }
  0x34   :  { %448 = vmatprep.subr.bf16.mxu0 %v637_v0  ;;  %452 = vmatprep.mubr.msk.bf16.mxu0 %vm638_vm0, %v637_v0  ;;  %v83_v3 = vld [vmem:[#allocation2] sm:$0xff]  ;;  %v84_v4 = vld [vmem:[#allocation2 + $0x8] sm:$0xff]  ;;  %v507_v5 = vld [vmem:[#allocation7 + $0x38] sm:$0xff]   ;;  %vm109_vm1 = vcmask 261120  }
  0x35   :  { %456 = vmatprep.subr.bf16.mxu1 %v637_v0  ;;  %472 = vmatprep.mubr.msk.bf16.mxu1 %vm638_vm0, %v637_v0  ;;  %v85_v6 = vpack.c.bf16 %v84_v4, %v83_v3  ;;  %v508_v7 = vld [vmem:[#allocation7 + $0x30] sm:$0xff]   ;;  %v509_v8 = vld [vmem:[#allocation7 + $0x28] sm:$0xff]   ;;  %v510_v9 = vld [vmem:[#allocation7 + $0x20] sm:$0xff]  }
  0x36   :  { %449 = vmatpush3.bf16.msra.mxu0 %v505_v1  ;;  %457 = vmatpush3.bf16.msra.mxu1 %v507_v5  ;;  %v511_v10 = vld [vmem:[#allocation7 + $0x18] sm:$0xff]   ;;  %v512_v11 = vld [vmem:[#allocation7 + $0x10] sm:$0xff]   ;;  %v513_v12 = vld [vmem:[#allocation7 + $0x8] sm:$0xff]  }
  0x37   :  { %450 = vmatprep.subr.bf16.mxu0 %v637_v0  ;;  %458 = vmatprep.subr.bf16.mxu1 %v637_v0  ;;  %v514_v13 = vld [vmem:[#allocation7] sm:$0xff]   ;;  %v515_v14 = vld [vmem:[#allocation8 + $0x38] sm:$0xff]   ;;  %v516_v15 = vld [vmem:[#allocation8 + $0x30] sm:$0xff]  }
  0x38   :  { %v517_v16 = vld [vmem:[#allocation8 + $0x28] sm:$0xff]   ;;  %v518_v17 = vld [vmem:[#allocation8 + $0x20] sm:$0xff]   ;;  %v519_v18 = vld [vmem:[#allocation8 + $0x18] sm:$0xff]  }
  0x39   :  { %v405_v19 = vld [vmem:[%s745_s2] ss:$0 sm:$0xff]  ;;  %v520_v29 = vld [vmem:[#allocation8 + $0x10] sm:$0xff]   ;;  %v521_v30 = vld [vmem:[#allocation8 + $0x8] sm:$0xff]  }
  0x3a   :  { %451 = vmatpush3.bf16.msra.mxu0 %v506_v2  ;;  %459 = vmatpush3.bf16.msra.mxu1 %v508_v7  ;;  %v522_v31 = vld [vmem:[#allocation8] sm:$0xff]  }
  0x3b   :  { %476 = vmatprep.subr.bf16.mxu0 %v637_v0  ;;  %460 = vmatprep.subr.bf16.mxu1 %v637_v0  ;;  %v409_v32 = vld [vmem:[%s747_s4] ss:$0 sm:$0xff] }
  0x3c   :  { %v418_v42 = vld [vmem:[%s749_s6] ss:$0 sm:$0xff] }
  0x3d   :  { %453 = vmatmul.mubr.msk.bf16.vlgmr.msra.gmra.mxu0 %vm109_vm1, %v85_v6 }
  0x3e   :  { %492 = vmatprep.mubr.msk.bf16.mxu0 %vm638_vm0, %v637_v0  ;;  %461 = vmatpush3.bf16.msra.mxu1 %v509_v8 }
  0x3f   :  { %462 = vmatprep.subr.bf16.mxu1 %v637_v0  ;;  %477 = vmatpush3.bf16.msra.mxu0 %v515_v14 }
  0x40   :  { %478 = vmatprep.subr.bf16.mxu0 %v637_v0 }
  0x42   :  { %463 = vmatpush3.bf16.msra.mxu1 %v510_v9 }
  0x43   :  { %464 = vmatprep.subr.bf16.mxu1 %v637_v0  ;;  %479 = vmatpush3.bf16.msra.mxu0 %v516_v15 }
  0x44   :  { %480 = vmatprep.subr.bf16.mxu0 %v637_v0 }
  0x46   :  { %465 = vmatpush3.bf16.msra.mxu1 %v511_v10 }
  0x47   :  { %466 = vmatprep.subr.bf16.mxu1 %v637_v0  ;;  %481 = vmatpush3.bf16.msra.mxu0 %v517_v16 }
  0x48   :  { %482 = vmatprep.subr.bf16.mxu0 %v637_v0 }
  0x4a   :  { %467 = vmatpush3.bf16.msra.mxu1 %v512_v11 }
  0x4b   :  { %468 = vmatprep.subr.bf16.mxu1 %v637_v0  ;;  %483 = vmatpush3.bf16.msra.mxu0 %v518_v17 }
  0x4c   :  { %484 = vmatprep.subr.bf16.mxu0 %v637_v0 }
  0x4e   :  { %469 = vmatpush3.bf16.msra.mxu1 %v513_v12 }
  0x4f   :  { %470 = vmatprep.subr.bf16.mxu1 %v637_v0  ;;  %485 = vmatpush3.bf16.msra.mxu0 %v519_v18 }
  0x50   :  { %486 = vmatprep.subr.bf16.mxu0 %v637_v0 }
  0x52   :  { %471 = vmatpush3.bf16.msra.mxu1 %v514_v13 }
  0x53   :  { %487 = vmatpush3.bf16.msra.mxu0 %v520_v29 }
  0x54   :  { %488 = vmatprep.subr.bf16.mxu0 %v637_v0 }
  0x57   :  { %489 = vmatpush3.bf16.msra.mxu0 %v521_v30 }
  0x58   :  { %490 = vmatprep.subr.bf16.mxu0 %v637_v0 }
  0x5b   :  { %491 = vmatpush3.bf16.msra.mxu0 %v522_v31 }
  0xfd   :  { %v147_v20 = vpop.f32.mrf.mxu0 }
  0xfe   :  { %v148_v22 = vadd.f32 %v405_v19, %v147_v20 }
  0xff   :  { %v454_v21 = vpop.f32.mrf.mxu0 }
 0x100   :  { %v154_v26 = vmax.f32 %v148_v22, 0.0 }
 0x101   :  { %v150_v23 = vpop.f32.mrf.mxu0 }
 0x102   :  { %v151_v24 = vadd.f32 %v405_v19, %v150_v23 }
 0x103   :  { %v455_v25 = vpop.f32.mrf.mxu0 }
 0x104   :  { %v155_v27 = vmax.f32 %v151_v24, 0.0 }
 0x106   :  { %v156_v28 = vpack.c.bf16 %v155_v27, %v154_v26 }
 0x108   :  { %473 = vmatmul.mubr.bf16.vlgmr.msra.gmra.mxu1 %v156_v28 }
 0x1c8   :  { %v262_v33 = vpop.f32.mrf.mxu1 }
 0x1c9   :  { %v263_v35 = vadd.f32 %v409_v32, %v262_v33 }
 0x1ca   :  { %v474_v34 = vpop.f32.mrf.mxu1 }
 0x1cb   :  { %v269_v39 = vmax.f32 %v263_v35, 0.0 }
 0x1cc   :  { %v265_v36 = vpop.f32.mrf.mxu1 }
 0x1cd   :  { %v266_v37 = vadd.f32 %v409_v32, %v265_v36 }
 0x1ce   :  { %v475_v38 = vpop.f32.mrf.mxu1 }
 0x1cf   :  { %v270_v40 = vmax.f32 %v266_v37, 0.0 }
 0x1d1   :  { %v271_v41 = vpack.c.bf16 %v270_v40, %v269_v39 }
 0x1d3   :  { %493 = vmatmul.mubr.bf16.vlgmr.msra.gmra.mxu0 %v271_v41 }
 0x293   :  { %v377_v43 = vpop.f32.mrf.mxu0 }
 0x294   :  { %v378_v44 = vadd.f32 %v418_v42, %v377_v43 }
 0x295   :  { %v494_v45 = vpop.f32.mrf.mxu0 }
 0x296   :  { %384 = vst [vmem:[#allocation10] sm:$0xff] %v378_v44 }
 0x297   :  { %v380_v46 = vpop.f32.mrf.mxu0 }
 0x298   :  { %v381_v47 = vadd.f32 %v418_v42, %v380_v46 }
 0x299   :  { %v495_v48 = vpop.f32.mrf.mxu0 }
 0x29a   :  { %385 = vst [vmem:[#allocation10 + $0x8] sm:$0xff] %v381_v47 }
 0x29b   :  { %390 = vsyncadd [#allocation4], 192  ;;  %s639_s4 = smov [#allocation10]  }
 0x29c   :  { %s391_s25 = sshll.u32 %s639_s4, 4  ;;  %s392_s25 = int_to_ptr.vmem [resolvable:$true] %s391_s25 }
 0x29d   :  { %s603_s26 = scalar_lea.vmem %s392_s25, 64  ;;  %s607_s27 = scalar_lea.vmem %s392_s25, 256 }
 0x29e   :  { %p604_p6 = scmp.ne.s32.totalorder %s392_s25, %s603_s26  ;;  %p608_p7 = scmp.lt.s32.totalorder %s392_s25, %s392_s25 }
 0x29f   :  { %p609_p8 = scmp.lt.s32.totalorder %s607_s27, %s603_s26 }
 0x2a1   :  { %p610_p9 = por %p609_p8, %p608_p7 }
 0x2a3   :  { %p611_p10 = pnand %p610_p9, %p604_p6 }
 0x2a5   :  { %614 = shalt.err (!%p611_p10)
}
 0x2a6   :  { %397 = dma.vmem_to_hbm [thread:$0]  %s392_s25, 64, %s750_s7, [#allocation4], %s633_s29, %s633_s29, %s634_s30  }
 0x2a7   :  { %629 = dma.done.wait [#allocation4], 256  }
 0x2a8   :  { %630 = vsyncadd [#allocation4], 4294967040 }
 0x2a9   :  { %401 = vsyncpa [#allocation3], 1 }
 0x2aa   :  { %402 = vsyncpa [#allocation6], 1 }
 0x2ab   :  { %403 = vsyncpa [#allocation9], 1 }
 0x2ac   :  { %404 = vsyncpa [#allocation4], 1 }

</bundles_post_ra>
